<compile_context>
chip_gen: v7x
topology: tpu7x:2x2x1
jax: 0.10.0
libtpu: 0.0.40
codegen_flags: <defaults>
</compile_context>

<pallas_src>
import functools

import jax
import jax.numpy as jnp
from jax.experimental import pallas as pl
from jax.experimental.pallas import tpu as pltpu


def _batchnorm_kernel(x_ref, log_gamma_ref, beta_ref,
                      y_ref, ldj_ref, mean_ref, var_ref, *, eps):
    """Per-feature-tile kernel.

    Block shapes:
      x_ref, y_ref              : (N, TD)   -- whole batch, a slab of features
      log_gamma_ref, beta_ref   : (1, TD)
      ldj_ref, mean_ref, var_ref: (1, TD)

    The batch-reduction axis (N) lives entirely inside the block, so each grid
    step is independent (feature axis is "parallel").
    """
    x = x_ref[...]
    if x.dtype != jnp.float32:
        x = x.astype(jnp.float32)
    n = x.shape[0]

    mean = jnp.mean(x, axis=0, keepdims=True)                       # (1, TD)
    diff = x - mean                                                 # (N, TD)
    # torch.Tensor.var defaults to unbiased (divide by N-1).
    var = jnp.sum(diff * diff, axis=0, keepdims=True) * (1.0 / (n - 1))

    inv_std = jax.lax.rsqrt(var + eps)                              # (1, TD)
    log_gamma = log_gamma_ref[...]                                  # (1, TD)
    beta = beta_ref[...]                                            # (1, TD)

    # Fuse the two per-element multiplies into one: y = scale*diff + beta.
    scale = jnp.exp(log_gamma) * inv_std                            # (1, TD)
    y = scale * diff + beta                                         # (N, TD)
    # log(inv_std) == -0.5 * log(var + eps): reuse the rsqrt result.
    ldj = log_gamma + jnp.log(inv_std)                              # (1, TD)

    y_ref[...] = y.astype(y_ref.dtype)
    ldj_ref[...] = ldj
    mean_ref[...] = mean
    var_ref[...] = var


def _pick_feature_tile(d, n, itemsize):
    """Feature-axis tile width: largest lane-aligned divisor of d that keeps
    the double-buffered x + y tiles within a ~16 MiB VMEM budget."""
    if d <= 512 or d % 128 != 0:
        return d  # single full-width block (still valid: block == array dim)
    budget = 16 * 1024 * 1024
    td = d
    while td >= 128:
        if d % td == 0 and 4 * n * td * itemsize <= budget:
            return td
        td -= 128
    return 128


def batchnorm_forward(x, log_gamma, beta, running_mean, running_var,
                      momentum=0.9, eps=1e-5):
    """Training-mode forward of the RealNVP BatchNorm layer.

    Returns (y, log_abs_det_jacobian, new_running_mean, new_running_var).
    The running-stat EMA (a buffer mutation in PyTorch) is done functionally in
    plain JAX from the batch stats produced by the kernel.
    """
    orig_shape = x.shape
    d = orig_shape[-1]
    x2d = x.reshape(-1, d)
    n = x2d.shape[0]

    lg2d = log_gamma.reshape(1, d).astype(jnp.float32)
    beta2d = beta.reshape(1, d).astype(jnp.float32)

    itemsize = jnp.dtype(x.dtype).itemsize
    td = _pick_feature_tile(d, n, itemsize)
    grid = (d // td,)

    kernel = functools.partial(_batchnorm_kernel, eps=float(eps))

    x_spec = pl.BlockSpec((n, td), lambda j: (0, j))
    row_spec = pl.BlockSpec((1, td), lambda j: (0, j))

    bytes_accessed = (n * d * itemsize            # x in
                      + 2 * d * 4                 # log_gamma, beta in
                      + n * d * itemsize          # y out
                      + 3 * d * 4)                # ldj, mean, var out
    cost = pl.CostEstimate(flops=5 * n * d,
                           transcendentals=3 * d,
                           bytes_accessed=bytes_accessed)

    # Double-buffered x tile + y tile dominate the VMEM footprint.
    tile_io_bytes = 4 * n * td * itemsize         # 2 buffers each for x and y
    vmem_limit = int(min(100 * 1024 * 1024,
                         max(32 * 1024 * 1024, tile_io_bytes + (2 << 20))))

    y2d, ldj_row, bmean, bvar = pl.pallas_call(
        kernel,
        grid=grid,
        in_specs=[x_spec, row_spec, row_spec],
        out_specs=[x_spec, row_spec, row_spec, row_spec],
        out_shape=[
            jax.ShapeDtypeStruct((n, d), x.dtype),
            jax.ShapeDtypeStruct((1, d), jnp.float32),
            jax.ShapeDtypeStruct((1, d), jnp.float32),
            jax.ShapeDtypeStruct((1, d), jnp.float32),
        ],
        compiler_params=pltpu.CompilerParams(
            dimension_semantics=("parallel",),
            vmem_limit_bytes=vmem_limit),
        cost_estimate=cost,
    )(x2d, lg2d, beta2d)

    y = y2d.reshape(orig_shape)
    # Lazy broadcast outside the kernel (expand_as in the PyTorch module).
    ldj = jnp.broadcast_to(ldj_row.reshape((1,) * (x.ndim - 1) + (d,)),
                           orig_shape)

    # running_mean.mul_(momentum).add_(batch_mean * (1 - momentum)); same for var.
    new_running_mean = running_mean * momentum + bmean[0] * (1.0 - momentum)
    new_running_var = running_var * momentum + bvar[0] * (1.0 - momentum)
    return y, ldj, new_running_mean, new_running_var


def _reference_forward(x, log_gamma, beta, running_mean, running_var,
                       momentum=0.9, eps=1e-5):
    d = x.shape[-1]
    x2d = x.reshape(-1, d).astype(jnp.float32)
    mean = jnp.mean(x2d, axis=0)
    var = jnp.sum((x2d - mean) ** 2, axis=0) / (x2d.shape[0] - 1)
    x_hat = (x - mean) / jnp.sqrt(var + eps)
    y = jnp.exp(log_gamma) * x_hat + beta
    ldj = jnp.broadcast_to(log_gamma - 0.5 * jnp.log(var + eps), x.shape)
    rm = running_mean * momentum + mean * (1.0 - momentum)
    rv = running_var * momentum + var * (1.0 - momentum)
    return y.astype(x.dtype), ldj, rm, rv


if __name__ == "__main__":
    # --- case 1: tiny shape matching the module's toy use (batch=8, D=32) ---
    key = jax.random.PRNGKey(0)
    batch, input_size = 8, 32
    x = jax.random.normal(key, (batch, input_size), dtype=jnp.float32)

    log_gamma = jnp.zeros((input_size,), jnp.float32)
    beta = jnp.zeros((input_size,), jnp.float32)
    running_mean = jnp.zeros((input_size,), jnp.float32)
    running_var = jnp.ones((input_size,), jnp.float32)

    out = batchnorm_forward(x, log_gamma, beta, running_mean, running_var,
                            momentum=0.9, eps=1e-5)
    jax.block_until_ready(out)
    y, ldj, rm, rv = out
    y_r, ldj_r, rm_r, rv_r = _reference_forward(
        x, log_gamma, beta, running_mean, running_var, momentum=0.9, eps=1e-5)
    assert jnp.allclose(y, y_r, atol=1e-5, rtol=1e-5)
    assert jnp.allclose(ldj, ldj_r, atol=1e-5, rtol=1e-5)
    assert jnp.allclose(rm, rm_r, atol=1e-5, rtol=1e-5)
    assert jnp.allclose(rv, rv_r, atol=1e-5, rtol=1e-5)

    # --- case 2: non-trivial params, 3-D input, D large enough to exercise the
    #             feature-axis grid (D=1024 -> multiple lane-aligned tiles) ---
    k1, k2, k3 = jax.random.split(jax.random.PRNGKey(0), 3)
    d2 = 1024
    x2 = jax.random.normal(k1, (4, 16, d2), dtype=jnp.float32)
    lg2 = 0.1 * jax.random.normal(k2, (d2,), dtype=jnp.float32)
    b2 = 0.1 * jax.random.normal(k3, (d2,), dtype=jnp.float32)
    rm0 = jnp.zeros((d2,), jnp.float32)
    rv0 = jnp.ones((d2,), jnp.float32)

    out2 = batchnorm_forward(x2, lg2, b2, rm0, rv0, momentum=0.9, eps=1e-5)
    jax.block_until_ready(out2)
    y2, ldj2, rm2, rv2 = out2
    y2_r, ldj2_r, rm2_r, rv2_r = _reference_forward(
        x2, lg2, b2, rm0, rv0, momentum=0.9, eps=1e-5)
    assert jnp.allclose(y2, y2_r, atol=1e-4, rtol=1e-4)
    assert jnp.allclose(ldj2, ldj2_r, atol=1e-5, rtol=1e-5)
    assert jnp.allclose(rm2, rm2_r, atol=1e-5, rtol=1e-5)
    assert jnp.allclose(rv2, rv2_r, atol=1e-4, rtol=1e-4)

    print("KERNEL_OK")
</pallas_src>

<mosaic_0001>
module attributes {stable_mosaic.version = 11 : i64} {
  func.func @_batchnorm_kernel(%arg0: i32, %arg1: memref<8x32xf32, #tpu.memory_space<vmem>>, %arg2: memref<1x32xf32, #tpu.memory_space<vmem>>, %arg3: memref<1x32xf32, #tpu.memory_space<vmem>>, %arg4: memref<8x32xf32, #tpu.memory_space<vmem>>, %arg5: memref<1x32xf32, #tpu.memory_space<vmem>>, %arg6: memref<1x32xf32, #tpu.memory_space<vmem>>, %arg7: memref<1x32xf32, #tpu.memory_space<vmem>>) attributes {dimension_semantics = [#tpu.dimension_semantics<parallel>], iteration_bounds = array<i64: 1>, scalar_prefetch = 0 : i64, scratch_operands = 0 : i64, tpu.core_type = #tpu.core_type<tc>, window_params = [{transform_indices = @transform_0, window_bounds = array<i64: 8, 32>}, {transform_indices = @transform_1, window_bounds = array<i64: 1, 32>}, {transform_indices = @transform_2, window_bounds = array<i64: 1, 32>}, {transform_indices = @transform_3, window_bounds = array<i64: 8, 32>}, {transform_indices = @transform_4, window_bounds = array<i64: 1, 32>}, {transform_indices = @transform_5, window_bounds = array<i64: 1, 32>}, {transform_indices = @transform_6, window_bounds = array<i64: 1, 32>}]} {
    %c0 = arith.constant 0 : index
    %c0_0 = arith.constant 0 : index
    %0 = vector.load %arg1[%c0, %c0_0] : memref<8x32xf32, #tpu.memory_space<vmem>>, vector<8x32xf32>
    %cst = arith.constant dense<0.000000e+00> : vector<32xf32>
    %1 = vector.multi_reduction <add>, %0, %cst [0] : vector<8x32xf32> to vector<32xf32>
    %2 = vector.shape_cast %1 : vector<32xf32> to vector<1x32xf32>
    %cst_1 = arith.constant 8.000000e+00 : f32
    %3 = vector.broadcast %cst_1 : f32 to vector<1x32xf32>
    %4 = arith.divf %2, %3 : vector<1x32xf32>
    %5 = vector.broadcast %4 : vector<1x32xf32> to vector<8x32xf32>
    %6 = arith.subf %0, %5 : vector<8x32xf32>
    %7 = arith.mulf %6, %6 : vector<8x32xf32>
    %cst_2 = arith.constant dense<0.000000e+00> : vector<32xf32>
    %8 = vector.multi_reduction <add>, %7, %cst_2 [0] : vector<8x32xf32> to vector<32xf32>
    %9 = vector.shape_cast %8 : vector<32xf32> to vector<1x32xf32>
    %cst_3 = arith.constant 0.142857149 : f32
    %10 = vector.broadcast %cst_3 : f32 to vector<1x32xf32>
    %11 = arith.mulf %9, %10 : vector<1x32xf32>
    %cst_4 = arith.constant 9.99999974E-6 : f32
    %12 = vector.broadcast %cst_4 : f32 to vector<1x32xf32>
    %13 = arith.addf %11, %12 : vector<1x32xf32>
    %14 = math.rsqrt %13 : vector<1x32xf32>
    %c0_5 = arith.constant 0 : index
    %c0_6 = arith.constant 0 : index
    %15 = vector.load %arg2[%c0_5, %c0_6] : memref<1x32xf32, #tpu.memory_space<vmem>>, vector<1x32xf32>
    %c0_7 = arith.constant 0 : index
    %c0_8 = arith.constant 0 : index
    %16 = vector.load %arg3[%c0_7, %c0_8] : memref<1x32xf32, #tpu.memory_space<vmem>>, vector<1x32xf32>
    %17 = math.exp %15 : vector<1x32xf32>
    %18 = arith.mulf %17, %14 : vector<1x32xf32>
    %19 = vector.broadcast %18 : vector<1x32xf32> to vector<8x32xf32>
    %20 = arith.mulf %19, %6 : vector<8x32xf32>
    %21 = vector.broadcast %16 : vector<1x32xf32> to vector<8x32xf32>
    %22 = arith.addf %20, %21 : vector<8x32xf32>
    %23 = math.log %14 : vector<1x32xf32>
    %24 = arith.addf %15, %23 : vector<1x32xf32>
    %c0_9 = arith.constant 0 : index
    %c0_10 = arith.constant 0 : index
    %25 = vector.load %arg4[%c0_9, %c0_10] : memref<8x32xf32, #tpu.memory_space<vmem>>, vector<8x32xf32>
    tpu.vector_store %arg4[%c0_9, %c0_10], %22 {strides = array<i32>} : memref<8x32xf32, #tpu.memory_space<vmem>>, vector<8x32xf32>,
    %c0_11 = arith.constant 0 : index
    %c0_12 = arith.constant 0 : index
    %26 = vector.load %arg5[%c0_11, %c0_12] : memref<1x32xf32, #tpu.memory_space<vmem>>, vector<1x32xf32>
    tpu.vector_store %arg5[%c0_11, %c0_12], %24 {strides = array<i32>} : memref<1x32xf32, #tpu.memory_space<vmem>>, vector<1x32xf32>,
    %c0_13 = arith.constant 0 : index
    %c0_14 = arith.constant 0 : index
    %27 = vector.load %arg6[%c0_13, %c0_14] : memref<1x32xf32, #tpu.memory_space<vmem>>, vector<1x32xf32>
    tpu.vector_store %arg6[%c0_13, %c0_14], %4 {strides = array<i32>} : memref<1x32xf32, #tpu.memory_space<vmem>>, vector<1x32xf32>,
    %c0_15 = arith.constant 0 : index
    %c0_16 = arith.constant 0 : index
    %28 = vector.load %arg7[%c0_15, %c0_16] : memref<1x32xf32, #tpu.memory_space<vmem>>, vector<1x32xf32>
    tpu.vector_store %arg7[%c0_15, %c0_16], %11 {strides = array<i32>} : memref<1x32xf32, #tpu.memory_space<vmem>>, vector<1x32xf32>,
    return
  }
  func.func @transform_0(%arg0: i32) -> (i32, i32) {
    %c0_i32 = arith.constant 0 : i32
    %c0_i32_0 = arith.constant 0 : i32
    return %c0_i32, %arg0 : i32, i32
  }
  func.func @transform_1(%arg0: i32) -> (i32, i32) {
    %c0_i32 = arith.constant 0 : i32
    %c0_i32_0 = arith.constant 0 : i32
    return %c0_i32, %arg0 : i32, i32
  }
  func.func @transform_2(%arg0: i32) -> (i32, i32) {
    %c0_i32 = arith.constant 0 : i32
    %c0_i32_0 = arith.constant 0 : i32
    return %c0_i32, %arg0 : i32, i32
  }
  func.func @transform_3(%arg0: i32) -> (i32, i32) {
    %c0_i32 = arith.constant 0 : i32
    %c0_i32_0 = arith.constant 0 : i32
    return %c0_i32, %arg0 : i32, i32
  }
  func.func @transform_4(%arg0: i32) -> (i32, i32) {
    %c0_i32 = arith.constant 0 : i32
    %c0_i32_0 = arith.constant 0 : i32
    return %c0_i32, %arg0 : i32, i32
  }
  func.func @transform_5(%arg0: i32) -> (i32, i32) {
    %c0_i32 = arith.constant 0 : i32
    %c0_i32_0 = arith.constant 0 : i32
    return %c0_i32, %arg0 : i32, i32
  }
  func.func @transform_6(%arg0: i32) -> (i32, i32) {
    %c0_i32 = arith.constant 0 : i32
    %c0_i32_0 = arith.constant 0 : i32
    return %c0_i32, %arg0 : i32, i32
  }
}

</mosaic_0001>

<bundles_post_ra>
// kernel: tpu_custom_call.1
= control target key start
LH: loop header
LB: loop body
LE: loop exit
PB: predicated region body
PF: predicated region fallthrough
CT: control target
= control target key end

     0   :  { %12 = vsyncpa [#allocation3], 0  ;;  %s389_s0 = inlined_call_operand.hbm [shape: f32[8,32], index: 0, kind: input, shape index: {}]   ;;  %s390_s1 = inlined_call_operand.vmem [shape: f32[1,32], index: 1, kind: input, shape index: {}]   ;;  %s391_s2 = inlined_call_operand.vmem [shape: f32[1,32], index: 2, kind: input, shape index: {}]   ;;  %s392_s3 = inlined_call_operand.hbm [shape: f32[8,32], index: 3, kind: output, shape index: {0}]   ;;  %s393_s4 = inlined_call_operand.hbm [shape: f32[1,32], index: 4, kind: output, shape index: {1}]   ;;  %s394_s5 = inlined_call_operand.hbm [shape: f32[1,32], index: 5, kind: output, shape index: {2}]   ;;  %s395_s6 = inlined_call_operand.hbm [shape: f32[1,32], index: 6, kind: output, shape index: {3}]  }
   0x1   :  { %13 = vsyncpa [#allocation4], 0 }
   0x2   :  { %14 = vsyncpa [#allocation7], 0 }
   0x3   :  { %15 = vsyncpa [#allocation10], 0  ;;  %s269_s21 = smov [#allocation2]   ;;  %s151_s25 = scalar_lea.hbm %s389_s0, 128 }
   0x4   :  { %s22_s22 = sshll.u32 %s269_s21, 4  ;;  %p152_p0 = scmp.ne.s32.totalorder %s389_s0, %s151_s25  ;;  %s23_s22 = int_to_ptr.vmem [resolvable:$true] %s22_s22 }
   0x5   :  { %p155_p1 = scmp.lt.u32.totalorder %s151_s25, %s389_s0 }
   0x7   :  { %p157_p2 = pnand %p155_p1, %p152_p0 }
   0x9   :  { %160 = shalt.err (!%p157_p2)
}
   0xa   :  { %s161_s30 = scalar_lea.vmem %s23_s22, 128  ;;  %p166_p4 = scmp.lt.s32.totalorder %s23_s22, %s23_s22 }
   0xb   :  { %p162_p3 = scmp.ne.s32.totalorder %s23_s22, %s161_s30  ;;  %p167_p5 = scmp.lt.s32.totalorder %s161_s30, %s161_s30 }
   0xd   :  { %p168_p6 = por %p167_p5, %p166_p4 }
   0xf   :  { %p169_p7 = pnand %p168_p6, %p162_p3 }
  0x11   :  { %172 = shalt.err (!%p169_p7)
}
  0x12   :  { %25 = dma.hbm_to_vmem [thread:$0]  %s389_s0, 128, %s23_s22, [#allocation3]  }
  0x13   :  { %261 = dma.done.wait [#allocation3], 128  }
  0x14   :  { %262 = vsyncadd [#allocation3], 4294967168  ;;  %vm34_vm0 = vcmask 261120   ;;  %v33_v0 = vld [vmem:[#allocation2] sm:$0xff]  ;;  %vm79_vm1 = vcmask 253952   ;;  %s270_s10 = smov [#allocation9]  }
  0x15   :  { %v35_v1 = vsel %vm34_vm0, %v33_v0, 0.0  ;;  %v56_v16 = vld [vmem:[%s390_s1] sm:$0x1]  ;;  %s119_s11 = sshll.u32 %s270_s10, 4  ;;  %s120_s11 = int_to_ptr.vmem [resolvable:$true] %s119_s11 }
  0x16   :  { %v36_v2 = vrot.slane %v35_v1, 4  ;;  %v58_v19 = vmul.f32 1.442695, %v56_v16  ;;  %s173_s12 = scalar_lea.vmem %s120_s11, 16  ;;  %s177_s13 = scalar_lea.vmem %s120_s11, 32 }
  0x17   :  { %p174_p8 = scmp.ne.s32.totalorder %s120_s11, %s173_s12  ;;  %p178_p9 = scmp.lt.s32.totalorder %s120_s11, %s120_s11 }
  0x18   :  { %v37_v3 = vadd.f32 %v36_v2, %v35_v1  ;;  %145 = vpow2.f32 %v58_v19  ;;  %p179_p10 = scmp.lt.s32.totalorder %s177_s13, %s173_s12 }
  0x1a   :  { %v38_v4 = vrot.slane %v37_v3, 2  ;;  %p180_p11 = por %p179_p10, %p178_p9 }
  0x1c   :  { %v39_v5 = vadd.f32 %v38_v4, %v37_v3  ;;  %p181_p12 = pnand %p180_p11, %p174_p8 }
  0x1e   :  { %v40_v6 = vrot.slane %v39_v5, 1 }
  0x20   :  { %v41_v7 = vadd.f32 %v40_v6, %v39_v5 }
  0x22   :  { %v43_v8 = vmul.f32 0.125, %v41_v7 }
  0x24   :  { %v44_v9 = vsub.f32 %v33_v0, %v43_v8  ;;  %81 = vst.msk [vmem:[#allocation8] sm:$0x1] %vm79_vm1, %v43_v8 }
  0x26   :  { %v45_v10 = vmul.f32 %v44_v9, %v44_v9 }
  0x28   :  { %v46_v11 = vsel %vm34_vm0, %v45_v10, 0.0 }
  0x29   :  { %v47_v12 = vrot.slane %v46_v11, 4 }
  0x2b   :  { %v48_v13 = vadd.f32 %v47_v12, %v46_v11 }
  0x2d   :  { %v49_v14 = vrot.slane %v48_v13, 2 }
  0x2f   :  { %v50_v15 = vadd.f32 %v49_v14, %v48_v13 }
  0x31   :  { %v51_v17 = vrot.slane %v50_v15, 1 }
  0x33   :  { %v52_v18 = vadd.f32 %v51_v17, %v50_v15 }
  0x35   :  { %v53_v20 = vmul.f32 0.14285715, %v52_v18 }
  0x37   :  { %v54_v21 = vadd.f32 1e-05, %v53_v20  ;;  %82 = vst.msk [vmem:[#allocation9] sm:$0x1] %vm79_vm1, %v53_v20 }
  0x38   :  { %184 = shalt.err (!%p181_p12)
}
  0x39   :  { %s185_s15 = scalar_lea.hbm %s395_s6, 16 }
  0x3a   :  { %p186_p13 = scmp.ne.s32.totalorder %s395_s6, %s185_s15  ;;  %p189_p0 = scmp.lt.u32.totalorder %s185_s15, %s395_s6 }
  0x3c   :  { %p191_p1 = pnand %p189_p0, %p186_p13 }
  0x3e   :  { %194 = shalt.err (!%p191_p1)
}
  0x3f   :  { %122 = dma.vmem_to_hbm [thread:$0]  %s120_s11, 16, %s395_s6, [#allocation10]   ;;  %147 = vrsqrt.f32 %v54_v21  ;;  %v62_v22 = vlaneseq  ;;  %v146_v24 = vpop.eup %145  ;;  %v139_v29 = vld [vmem:[%s391_s2] ss:$0 sm:$0xff] }
  0x40   :  { %s271_s24 = smov [#allocation5]  }
  0x41   :  { %v63_v23 = vshrl.u32 %v62_v22, 7  ;;  %s89_s25 = sshll.u32 %s271_s24, 4  ;;  %s90_s25 = int_to_ptr.vmem [resolvable:$true] %s89_s25 }
  0x42   :  { %s195_s6 = scalar_lea.vmem %s90_s25, 128  ;;  %p200_p3 = scmp.lt.s32.totalorder %s90_s25, %s90_s25 }
  0x43   :  { %v64_v25 = vsub.s32 0, %v63_v23  ;;  %p196_p2 = scmp.ne.s32.totalorder %s90_s25, %s195_s6  ;;  %p201_p4 = scmp.lt.s32.totalorder %s195_s6, %s195_s6 }
  0x45   :  { %p202_p5 = por %p201_p4, %p200_p3 }
  0x47   :  { %p203_p6 = pnand %p202_p5, %p196_p2 }
  0x49   :  { %v148_v26 = vpop.eup %147 }
  0x4a   :  { %149 = vlog2.f32 %v148_v26  ;;  %v60_v27 = vmul.f32 %v148_v26, %v146_v24 }
  0x4c   :  { %v65_v28 = vrot.slane %v60_v27, %v64_v25 }
  0x4e   :  { %v67_v30 = vmul.f32 %v65_v28, %v44_v9 }
  0x50   :  { %v74_v31 = vadd.f32 %v139_v29, %v67_v30 }
  0x52   :  { %78 = vst.msk [vmem:[#allocation5] sm:$0xff] %vm34_vm0, %v74_v31 }
  0x53   :  { %206 = shalt.err (!%p203_p6)
}
  0x54   :  { %s207_s28 = scalar_lea.hbm %s392_s3, 128 }
  0x55   :  { %p208_p7 = scmp.ne.s32.totalorder %s392_s3, %s207_s28  ;;  %p211_p8 = scmp.lt.u32.totalorder %s207_s28, %s392_s3 }
  0x57   :  { %p213_p9 = pnand %p211_p8, %p208_p7 }
  0x59   :  { %216 = shalt.err (!%p213_p9)
}
  0x5a   :  { %92 = dma.vmem_to_hbm [thread:$0]  %s90_s25, 128, %s392_s3, [#allocation4]   ;;  %v150_v32 = vpop.eup %149 }
  0x5b   :  { %s272_s9 = smov [#allocation6]   ;;  %v76_v33 = vmul.f32 0.6931472, %v150_v32  ;;  %s273_s11 = smov [#allocation8]  }
  0x5c   :  { %s99_s10 = sshll.u32 %s272_s9, 4  ;;  %s109_s12 = sshll.u32 %s273_s11, 4  ;;  %s100_s10 = int_to_ptr.vmem [resolvable:$true] %s99_s10  ;;  %s356_s12 = int_to_ptr.vmem [resolvable:$true] %s109_s12 }
  0x5d   :  { %v77_v34 = vadd.f32 %v76_v33, %v56_v16  ;;  %s217_s13 = scalar_lea.vmem %s100_s10, 16  ;;  %s221_s1 = scalar_lea.vmem %s100_s10, 32 }
  0x5e   :  { %p218_p10 = scmp.ne.s32.totalorder %s100_s10, %s217_s13  ;;  %p222_p11 = scmp.lt.s32.totalorder %s100_s10, %s100_s10 }
  0x5f   :  { %80 = vst.msk [vmem:[#allocation6] sm:$0x1] %vm79_vm1, %v77_v34  ;;  %p223_p12 = scmp.lt.s32.totalorder %s221_s1, %s217_s13 }
  0x61   :  { %p224_p13 = por %p223_p12, %p222_p11 }
  0x63   :  { %p225_p0 = pnand %p224_p13, %p218_p10 }
  0x65   :  { %228 = shalt.err (!%p225_p0)
}
  0x66   :  { %s229_s15 = scalar_lea.hbm %s393_s4, 16 }
  0x67   :  { %p230_p1 = scmp.ne.s32.totalorder %s393_s4, %s229_s15  ;;  %p233_p2 = scmp.lt.u32.totalorder %s229_s15, %s393_s4 }
  0x69   :  { %p235_p3 = pnand %p233_p2, %p230_p1 }
  0x6b   :  { %238 = shalt.err (!%p235_p3)
}
  0x6c   :  { %102 = dma.vmem_to_hbm [thread:$0]  %s100_s10, 16, %s393_s4, [#allocation7]  }
  0x6d   :  { %s239_s22 = scalar_lea.vmem %s356_s12, 16  ;;  %s243_s23 = scalar_lea.vmem %s356_s12, 32 }
  0x6e   :  { %p240_p4 = scmp.ne.s32.totalorder %s356_s12, %s239_s22  ;;  %p244_p5 = scmp.lt.s32.totalorder %s356_s12, %s356_s12 }
  0x6f   :  { %p245_p6 = scmp.lt.s32.totalorder %s243_s23, %s239_s22 }
  0x71   :  { %p246_p7 = por %p245_p6, %p244_p5 }
  0x73   :  { %p247_p8 = pnand %p246_p7, %p240_p4 }
  0x75   :  { %250 = shalt.err (!%p247_p8)
}
  0x76   :  { %s251_s6 = scalar_lea.hbm %s394_s5, 16 }
  0x77   :  { %p252_p9 = scmp.ne.s32.totalorder %s394_s5, %s251_s6  ;;  %p255_p10 = scmp.lt.u32.totalorder %s251_s6, %s394_s5 }
  0x79   :  { %p257_p11 = pnand %p255_p10, %p252_p9 }
  0x7b   :  { %260 = shalt.err (!%p257_p11)
}
  0x7c   :  { %112 = dma.vmem_to_hbm [thread:$0]  %s356_s12, 16, %s394_s5, [#allocation7]  }
  0x7d   :  { %263 = dma.done.wait [#allocation4], 128  }
  0x7e   :  { %264 = vsyncadd [#allocation4], 4294967168 }
  0x7f   :  { %265 = dma.done.wait [#allocation7], 32  }
  0x80   :  { %266 = vsyncadd [#allocation7], 4294967264 }
  0x81   :  { %267 = dma.done.wait [#allocation10], 16  }
  0x82   :  { %268 = vsyncadd [#allocation10], 4294967280 }
  0x83   :  { %135 = vsyncpa [#allocation3], 1 }
  0x84   :  { %136 = vsyncpa [#allocation4], 1 }
  0x85   :  { %137 = vsyncpa [#allocation7], 1 }
  0x86   :  { %138 = vsyncpa [#allocation10], 1 }

</bundles_post_ra>
